<compile_context>
chip_gen: v7x
topology: tpu7x:2x2x1
jax: 0.10.0
libtpu: 0.0.40
codegen_flags: <defaults>
</compile_context>

<pallas_src>
import functools

import jax
import jax.numpy as jnp
import numpy as np
from jax.experimental import pallas as pl
from jax.experimental.pallas import tpu as pltpu


def _round_up(x, m):
    return (x + m - 1) // m * m


# ----------------------------- Pallas kernel ------------------------------ #
def _conv_im2col_kernel(x_ref, w_ref, b_ref, o_ref, xbuf_ref, slab_ref, *,
                        B_blk, C, KH, KW, WP, HW, Pp, Lp):
    """Direct conv as ONE MXU matmul per grid step.

    x_ref:    (B_blk, C, HW)          raw flattened images (HW = HP*WP)
    w_ref:    (O, KH*KW*C)            weight with taps folded into K
    b_ref:    (O, 1)                  bias (f32)
    o_ref:    (B_blk, O, Pp)          dense outputs, Pp = round_up(HV*WP, 128)
    xbuf_ref: (B_blk, C, Lp)  VMEM    staged images + zeroed guard tail
    slab_ref: (KH*KW*C, B_blk*Pp)     stacked (im2col) tap slabs, built once
    """
    # Stage the raw image(s) into VMEM and zero the guard tail.  This replaces a
    # wrapper-side jnp.pad (a full HBM read+write of the input) for padding==0.
    for b in range(B_blk):
        xbuf_ref[b, :, :HW] = x_ref[b]
        if Lp > HW:
            xbuf_ref[b, :, HW:Lp] = jnp.zeros((C, Lp - HW), dtype=xbuf_ref.dtype)

    # Pre-stack the KH*KW tap-shifted slabs ONCE per step into the im2col scratch.
    # Each shifted window is materialized a single time (amortized over all output
    # channels) instead of being a lane-misaligned operand of KH*KW separate
    # matmuls.  All slab stores are lane-dense (Pp % 128 == 0) at 128-aligned
    # lane offsets (b*Pp).
    for b in range(B_blk):
        for i in range(KH):
            for j in range(KW):
                t = i * KW + j
                d = i * WP + j                      # static flat tap offset
                src = xbuf_ref[b, :, d:d + Pp]      # (C, Pp) shifted view
                slab_ref[t * C:(t + 1) * C, b * Pp:(b + 1) * Pp] = src

    # Single MXU matmul with all taps folded into the contraction dimension
    # (K = KH*KW*C instead of KH*KW matmuls with K = C).
    acc = jnp.dot(w_ref[...], slab_ref[...],
                  preferred_element_type=jnp.float32)        # (O, B_blk*Pp)

    bias = b_ref[...]                                        # (O, 1)
    for b in range(B_blk):
        o_ref[b] = (acc[:, b * Pp:(b + 1) * Pp] + bias).astype(o_ref.dtype)


def _vmem_limit_bytes(step_bytes):
    # Generation-aware VMEM budget (v5e/v6e: 128 MiB, v7x: 64 MiB physical) with
    # ~25% headroom, instead of a hard-coded cap.
    try:
        cap = int(pltpu.get_tpu_info().vmem_capacity_bytes)
    except Exception:
        cap = 64 << 20
    hi = (cap * 3) // 4
    return int(min(max(step_bytes + (4 << 20), 32 << 20), hi))


def _conv_tap_fold_pallas(x_flat, w2, b2, *, N, B_blk, C, O, KH, KW, WP, HW,
                          Pp, Lp):
    KT = KH * KW
    kernel = functools.partial(_conv_im2col_kernel, B_blk=B_blk, C=C, KH=KH,
                               KW=KW, WP=WP, HW=HW, Pp=Pp, Lp=Lp)

    itx = x_flat.dtype.itemsize
    itw = w2.dtype.itemsize
    # NOTE: flops counts the dense lane-padded positions the kernel actually
    # computes (over-counts the mathematically needed work for stride > 1).
    flops = 2 * N * O * KT * C * Pp
    bytes_accessed = (x_flat.size * itx + w2.size * itw + b2.size * 4
                      + N * O * Pp * 4)
    # Per-step VMEM: double-buffered x/out blocks, resident weight+bias, plus the
    # staging and im2col scratch buffers.
    step_bytes = (2 * B_blk * C * HW * itx
                  + 2 * B_blk * O * Pp * 4
                  + O * KT * C * itw + O * 4
                  + B_blk * C * Lp * itx
                  + KT * C * B_blk * Pp * itx)

    return pl.pallas_call(
        kernel,
        out_shape=jax.ShapeDtypeStruct((N, O, Pp), jnp.float32),
        grid=(N // B_blk,),
        in_specs=[
            pl.BlockSpec((B_blk, C, HW), lambda n: (n, 0, 0)),   # images
            pl.BlockSpec((O, KT * C), lambda n: (0, 0)),         # weight (resident)
            pl.BlockSpec((O, 1), lambda n: (0, 0)),              # bias   (resident)
        ],
        out_specs=pl.BlockSpec((B_blk, O, Pp), lambda n: (n, 0, 0)),
        scratch_shapes=[
            pltpu.VMEM((B_blk, C, Lp), x_flat.dtype),            # staged images
            pltpu.VMEM((KT * C, B_blk * Pp), x_flat.dtype),      # im2col slab
        ],
        compiler_params=pltpu.CompilerParams(
            dimension_semantics=("parallel",),
            vmem_limit_bytes=_vmem_limit_bytes(step_bytes),
        ),
        cost_estimate=pl.CostEstimate(
            flops=flops, transcendentals=0, bytes_accessed=bytes_accessed),
    )(x_flat, w2, b2)


# ------------------------------- JAX glue --------------------------------- #
@functools.partial(jax.jit, static_argnames=("stride", "padding", "use_bf16"))
def fft_conv2d_forward(x_nchw, weight, bias, *, stride=(1, 1), padding=(0, 0),
                       use_bf16=False):
    """Equivalent of FFT_Conv2D.forward (groups=1, dilation=1, zero padding).

    x_nchw:  (N, C, H, W)   float32
    weight:  (O, C, KH, KW) float32 (PyTorch layout)
    bias:    (O,)           float32
    returns: (N, O, OH, OW) float32
    """
    N, C, H, W = x_nchw.shape
    O, Cw, KH, KW = weight.shape
    assert Cw == C, "groups != 1 not supported"
    sh, sw = stride
    ph, pw = padding

    HP, WP = H + 2 * ph, W + 2 * pw
    OH = (HP - KH) // sh + 1
    OW = (WP - KW) // sw + 1
    HV = HP - KH + 1                 # dense (stride-1) vertical positions
    Pd = HV * WP                     # dense flattened output positions / image
    Pp = _round_up(Pd, 128)          # lane-padded -> unmasked lane-dense stores
    d_max = (KH - 1) * WP + (KW - 1)
    Lp = _round_up(d_max + Pp, 128)  # staged image length incl. guard tail
    HW = HP * WP

    if ph == 0 and pw == 0:
        x_flat = x_nchw.reshape(N, C, HW)      # free view; no HBM pad copy
    else:
        x_flat = jnp.pad(x_nchw, ((0, 0), (0, 0), (ph, ph), (pw, pw))
                         ).reshape(N, C, HW)

    # weight (O, C, KH, KW) -> (O, KH*KW*C): column index (i*KW + j)*C + c,
    # matching the im2col slab row order built in the kernel.
    w2 = jnp.transpose(weight, (0, 2, 3, 1)).reshape(O, KH * KW * C)
    b2 = bias.reshape(O, 1).astype(jnp.float32)

    cdt = jnp.bfloat16 if use_bf16 else jnp.float32   # bf16 operands optional
    x_flat = x_flat.astype(cdt)
    w2 = w2.astype(cdt)

    # Fold small images together so per-step matmul/store tiles are >= ~2K lanes.
    B_blk = max(1, min(N, 2048 // Pp))
    while N % B_blk:
        B_blk -= 1

    out_dense = _conv_tap_fold_pallas(
        x_flat, w2, b2, N=N, B_blk=B_blk, C=C, O=O, KH=KH, KW=KW,
        WP=WP, HW=HW, Pp=Pp, Lp=Lp)                       # (N, O, Pp)

    # Drop lane padding, un-flatten and pick the strided valid window -> NCHW.
    out4 = out_dense[:, :, :Pd].reshape(N, O, HV, WP)
    out = jax.lax.slice(out4, (0, 0, 0, 0),
                        (N, O, (OH - 1) * sh + 1, (OW - 1) * sw + 1),
                        (1, 1, sh, sw))
    return out


# ------------------------------ entry point -------------------------------- #
if __name__ == "__main__":
    # Module config (small, Conv2d defaults: stride=1, padding=0)
    N, C_in, H, W = 2, 4, 16, 16
    C_out, KH, KW = 8, 3, 3

    key = jax.random.PRNGKey(0)
    kx, kw_, kb = jax.random.split(key, 3)

    x = jax.random.normal(kx, (N, C_in, H, W), dtype=jnp.float32)

    # Deterministic init mimicking PyTorch Conv2d defaults.
    fan_in = C_in * KH * KW
    bound = 1.0 / np.sqrt(fan_in)
    weight = jax.random.uniform(kw_, (C_out, C_in, KH, KW),
                                minval=-bound, maxval=bound, dtype=jnp.float32)
    bias = jax.random.uniform(kb, (C_out,), minval=-bound, maxval=bound,
                              dtype=jnp.float32)

    out = fft_conv2d_forward(x, weight, bias, stride=(1, 1), padding=(0, 0))
    out = jax.block_until_ready(out)

    # Reference check against XLA's conv (same semantics as F.conv2d).
    ref = jax.lax.conv_general_dilated(
        x, weight, window_strides=(1, 1), padding="VALID",
        dimension_numbers=("NCHW", "OIHW", "NCHW"),
    ) + bias.reshape(1, C_out, 1, 1)
    ref = jax.block_until_ready(ref)

    np.testing.assert_allclose(np.asarray(out), np.asarray(ref),
                               rtol=1e-5, atol=1e-5)
    assert out.shape == (N, C_out, H - KH + 1, W - KW + 1)
    print("KERNEL_OK")
</pallas_src>

<mosaic_0001>
module attributes {stable_mosaic.version = 11 : i64} {
  func.func @_conv_im2col_kernel(%arg0: i32, %arg1: memref<2x4x256xf32, #tpu.memory_space<vmem>>, %arg2: memref<8x36xf32, #tpu.memory_space<vmem>>, %arg3: memref<8x1xf32, #tpu.memory_space<vmem>>, %arg4: memref<2x8x256xf32, #tpu.memory_space<vmem>>, %arg5: memref<2x4x384xf32, #tpu.memory_space<vmem>>, %arg6: memref<36x512xf32, #tpu.memory_space<vmem>>) attributes {dimension_semantics = [#tpu.dimension_semantics<parallel>], iteration_bounds = array<i64: 1>, scalar_prefetch = 0 : i64, scratch_operands = 2 : i64, tpu.core_type = #tpu.core_type<tc>, window_params = [{transform_indices = @transform_0, window_bounds = array<i64: 2, 4, 256>}, {pipeline_mode = #tpu.pipeline_mode<synchronous>, transform_indices = @transform_1, window_bounds = array<i64: 8, 36>}, {pipeline_mode = #tpu.pipeline_mode<synchronous>, transform_indices = @transform_2, window_bounds = array<i64: 8, 1>}, {transform_indices = @transform_3, window_bounds = array<i64: 2, 8, 256>}]} {
    %c0 = arith.constant 0 : index
    %c0_0 = arith.constant 0 : index
    %c0_1 = arith.constant 0 : index
    %0 = vector.load %arg1[%c0, %c0_0, %c0_1] : memref<2x4x256xf32, #tpu.memory_space<vmem>>, vector<1x4x256xf32>
    %1 = vector.shape_cast %0 : vector<1x4x256xf32> to vector<4x256xf32>
    %c0_2 = arith.constant 0 : index
    %c0_3 = arith.constant 0 : index
    %c0_4 = arith.constant 0 : index
    %2 = vector.load %arg5[%c0_2, %c0_3, %c0_4] : memref<2x4x384xf32, #tpu.memory_space<vmem>>, vector<1x4x256xf32>
    %3 = vector.shape_cast %2 : vector<1x4x256xf32> to vector<4x256xf32>
    %4 = vector.shape_cast %1 : vector<4x256xf32> to vector<1x4x256xf32>
    tpu.vector_store %arg5[%c0_2, %c0_3, %c0_4], %4 {strides = array<i32>} : memref<2x4x384xf32, #tpu.memory_space<vmem>>, vector<1x4x256xf32>,
    %cst = arith.constant 0.000000e+00 : f32
    %5 = vector.broadcast %cst : f32 to vector<4x128xf32>
    %c0_5 = arith.constant 0 : index
    %c0_6 = arith.constant 0 : index
    %c256 = arith.constant 256 : index
    %6 = vector.load %arg5[%c0_5, %c0_6, %c256] : memref<2x4x384xf32, #tpu.memory_space<vmem>>, vector<1x4x128xf32>
    %7 = vector.shape_cast %6 : vector<1x4x128xf32> to vector<4x128xf32>
    %8 = vector.shape_cast %5 : vector<4x128xf32> to vector<1x4x128xf32>
    tpu.vector_store %arg5[%c0_5, %c0_6, %c256], %8 {strides = array<i32>} : memref<2x4x384xf32, #tpu.memory_space<vmem>>, vector<1x4x128xf32>,
    %c1 = arith.constant 1 : index
    %c0_7 = arith.constant 0 : index
    %c0_8 = arith.constant 0 : index
    %9 = vector.load %arg1[%c1, %c0_7, %c0_8] : memref<2x4x256xf32, #tpu.memory_space<vmem>>, vector<1x4x256xf32>
    %10 = vector.shape_cast %9 : vector<1x4x256xf32> to vector<4x256xf32>
    %c1_9 = arith.constant 1 : index
    %c0_10 = arith.constant 0 : index
    %c0_11 = arith.constant 0 : index
    %11 = vector.load %arg5[%c1_9, %c0_10, %c0_11] : memref<2x4x384xf32, #tpu.memory_space<vmem>>, vector<1x4x256xf32>
    %12 = vector.shape_cast %11 : vector<1x4x256xf32> to vector<4x256xf32>
    %13 = vector.shape_cast %10 : vector<4x256xf32> to vector<1x4x256xf32>
    tpu.vector_store %arg5[%c1_9, %c0_10, %c0_11], %13 {strides = array<i32>} : memref<2x4x384xf32, #tpu.memory_space<vmem>>, vector<1x4x256xf32>,
    %cst_12 = arith.constant 0.000000e+00 : f32
    %14 = vector.broadcast %cst_12 : f32 to vector<4x128xf32>
    %c1_13 = arith.constant 1 : index
    %c0_14 = arith.constant 0 : index
    %c256_15 = arith.constant 256 : index
    %15 = vector.load %arg5[%c1_13, %c0_14, %c256_15] : memref<2x4x384xf32, #tpu.memory_space<vmem>>, vector<1x4x128xf32>
    %16 = vector.shape_cast %15 : vector<1x4x128xf32> to vector<4x128xf32>
    %17 = vector.shape_cast %14 : vector<4x128xf32> to vector<1x4x128xf32>
    tpu.vector_store %arg5[%c1_13, %c0_14, %c256_15], %17 {strides = array<i32>} : memref<2x4x384xf32, #tpu.memory_space<vmem>>, vector<1x4x128xf32>,
    %c0_16 = arith.constant 0 : index
    %c0_17 = arith.constant 0 : index
    %c0_18 = arith.constant 0 : index
    %18 = vector.load %arg5[%c0_16, %c0_17, %c0_18] : memref<2x4x384xf32, #tpu.memory_space<vmem>>, vector<1x4x256xf32>
    %19 = vector.shape_cast %18 : vector<1x4x256xf32> to vector<4x256xf32>
    %c0_19 = arith.constant 0 : index
    %c0_20 = arith.constant 0 : index
    %20 = vector.load %arg6[%c0_19, %c0_20] : memref<36x512xf32, #tpu.memory_space<vmem>>, vector<4x256xf32>
    tpu.vector_store %arg6[%c0_19, %c0_20], %19 {strides = array<i32>} : memref<36x512xf32, #tpu.memory_space<vmem>>, vector<4x256xf32>,
    %c0_21 = arith.constant 0 : index
    %c0_22 = arith.constant 0 : index
    %c1_23 = arith.constant 1 : index
    %21 = vector.load %arg5[%c0_21, %c0_22, %c1_23] : memref<2x4x384xf32, #tpu.memory_space<vmem>>, vector<1x4x256xf32>
    %22 = vector.shape_cast %21 : vector<1x4x256xf32> to vector<4x256xf32>
    %c4 = arith.constant 4 : index
    %c0_24 = arith.constant 0 : index
    %23 = vector.load %arg6[%c4, %c0_24] : memref<36x512xf32, #tpu.memory_space<vmem>>, vector<4x256xf32>
    tpu.vector_store %arg6[%c4, %c0_24], %22 {strides = array<i32>} : memref<36x512xf32, #tpu.memory_space<vmem>>, vector<4x256xf32>,
    %c0_25 = arith.constant 0 : index
    %c0_26 = arith.constant 0 : index
    %c2 = arith.constant 2 : index
    %24 = vector.load %arg5[%c0_25, %c0_26, %c2] : memref<2x4x384xf32, #tpu.memory_space<vmem>>, vector<1x4x256xf32>
    %25 = vector.shape_cast %24 : vector<1x4x256xf32> to vector<4x256xf32>
    %c8 = arith.constant 8 : index
    %c0_27 = arith.constant 0 : index
    %26 = vector.load %arg6[%c8, %c0_27] : memref<36x512xf32, #tpu.memory_space<vmem>>, vector<4x256xf32>
    tpu.vector_store %arg6[%c8, %c0_27], %25 {strides = array<i32>} : memref<36x512xf32, #tpu.memory_space<vmem>>, vector<4x256xf32>,
    %c0_28 = arith.constant 0 : index
    %c0_29 = arith.constant 0 : index
    %c16 = arith.constant 16 : index
    %27 = vector.load %arg5[%c0_28, %c0_29, %c16] : memref<2x4x384xf32, #tpu.memory_space<vmem>>, vector<1x4x256xf32>
    %28 = vector.shape_cast %27 : vector<1x4x256xf32> to vector<4x256xf32>
    %c12 = arith.constant 12 : index
    %c0_30 = arith.constant 0 : index
    %29 = vector.load %arg6[%c12, %c0_30] : memref<36x512xf32, #tpu.memory_space<vmem>>, vector<4x256xf32>
    tpu.vector_store %arg6[%c12, %c0_30], %28 {strides = array<i32>} : memref<36x512xf32, #tpu.memory_space<vmem>>, vector<4x256xf32>,
    %c0_31 = arith.constant 0 : index
    %c0_32 = arith.constant 0 : index
    %c17 = arith.constant 17 : index
    %30 = vector.load %arg5[%c0_31, %c0_32, %c17] : memref<2x4x384xf32, #tpu.memory_space<vmem>>, vector<1x4x256xf32>
    %31 = vector.shape_cast %30 : vector<1x4x256xf32> to vector<4x256xf32>
    %c16_33 = arith.constant 16 : index
    %c0_34 = arith.constant 0 : index
    %32 = vector.load %arg6[%c16_33, %c0_34] : memref<36x512xf32, #tpu.memory_space<vmem>>, vector<4x256xf32>
    tpu.vector_store %arg6[%c16_33, %c0_34], %31 {strides = array<i32>} : memref<36x512xf32, #tpu.memory_space<vmem>>, vector<4x256xf32>,
    %c0_35 = arith.constant 0 : index
    %c0_36 = arith.constant 0 : index
    %c18 = arith.constant 18 : index
    %33 = vector.load %arg5[%c0_35, %c0_36, %c18] : memref<2x4x384xf32, #tpu.memory_space<vmem>>, vector<1x4x256xf32>
    %34 = vector.shape_cast %33 : vector<1x4x256xf32> to vector<4x256xf32>
    %c20 = arith.constant 20 : index
    %c0_37 = arith.constant 0 : index
    %35 = vector.load %arg6[%c20, %c0_37] : memref<36x512xf32, #tpu.memory_space<vmem>>, vector<4x256xf32>
    tpu.vector_store %arg6[%c20, %c0_37], %34 {strides = array<i32>} : memref<36x512xf32, #tpu.memory_space<vmem>>, vector<4x256xf32>,
    %c0_38 = arith.constant 0 : index
    %c0_39 = arith.constant 0 : index
    %c32 = arith.constant 32 : index
    %36 = vector.load %arg5[%c0_38, %c0_39, %c32] : memref<2x4x384xf32, #tpu.memory_space<vmem>>, vector<1x4x256xf32>
    %37 = vector.shape_cast %36 : vector<1x4x256xf32> to vector<4x256xf32>
    %c24 = arith.constant 24 : index
    %c0_40 = arith.constant 0 : index
    %38 = vector.load %arg6[%c24, %c0_40] : memref<36x512xf32, #tpu.memory_space<vmem>>, vector<4x256xf32>
    tpu.vector_store %arg6[%c24, %c0_40], %37 {strides = array<i32>} : memref<36x512xf32, #tpu.memory_space<vmem>>, vector<4x256xf32>,
    %c0_41 = arith.constant 0 : index
    %c0_42 = arith.constant 0 : index
    %c33 = arith.constant 33 : index
    %39 = vector.load %arg5[%c0_41, %c0_42, %c33] : memref<2x4x384xf32, #tpu.memory_space<vmem>>, vector<1x4x256xf32>
    %40 = vector.shape_cast %39 : vector<1x4x256xf32> to vector<4x256xf32>
    %c28 = arith.constant 28 : index
    %c0_43 = arith.constant 0 : index
    %41 = vector.load %arg6[%c28, %c0_43] : memref<36x512xf32, #tpu.memory_space<vmem>>, vector<4x256xf32>
    tpu.vector_store %arg6[%c28, %c0_43], %40 {strides = array<i32>} : memref<36x512xf32, #tpu.memory_space<vmem>>, vector<4x256xf32>,
    %c0_44 = arith.constant 0 : index
    %c0_45 = arith.constant 0 : index
    %c34 = arith.constant 34 : index
    %42 = vector.load %arg5[%c0_44, %c0_45, %c34] : memref<2x4x384xf32, #tpu.memory_space<vmem>>, vector<1x4x256xf32>
    %43 = vector.shape_cast %42 : vector<1x4x256xf32> to vector<4x256xf32>
    %c32_46 = arith.constant 32 : index
    %c0_47 = arith.constant 0 : index
    %44 = vector.load %arg6[%c32_46, %c0_47] : memref<36x512xf32, #tpu.memory_space<vmem>>, vector<4x256xf32>
    tpu.vector_store %arg6[%c32_46, %c0_47], %43 {strides = array<i32>} : memref<36x512xf32, #tpu.memory_space<vmem>>, vector<4x256xf32>,
    %c1_48 = arith.constant 1 : index
    %c0_49 = arith.constant 0 : index
    %c0_50 = arith.constant 0 : index
    %45 = vector.load %arg5[%c1_48, %c0_49, %c0_50] : memref<2x4x384xf32, #tpu.memory_space<vmem>>, vector<1x4x256xf32>
    %46 = vector.shape_cast %45 : vector<1x4x256xf32> to vector<4x256xf32>
    %c0_51 = arith.constant 0 : index
    %c256_52 = arith.constant 256 : index
    %47 = vector.load %arg6[%c0_51, %c256_52] : memref<36x512xf32, #tpu.memory_space<vmem>>, vector<4x256xf32>
    tpu.vector_store %arg6[%c0_51, %c256_52], %46 {strides = array<i32>} : memref<36x512xf32, #tpu.memory_space<vmem>>, vector<4x256xf32>,
    %c1_53 = arith.constant 1 : index
    %c0_54 = arith.constant 0 : index
    %c1_55 = arith.constant 1 : index
    %48 = vector.load %arg5[%c1_53, %c0_54, %c1_55] : memref<2x4x384xf32, #tpu.memory_space<vmem>>, vector<1x4x256xf32>
    %49 = vector.shape_cast %48 : vector<1x4x256xf32> to vector<4x256xf32>
    %c4_56 = arith.constant 4 : index
    %c256_57 = arith.constant 256 : index
    %50 = vector.load %arg6[%c4_56, %c256_57] : memref<36x512xf32, #tpu.memory_space<vmem>>, vector<4x256xf32>
    tpu.vector_store %arg6[%c4_56, %c256_57], %49 {strides = array<i32>} : memref<36x512xf32, #tpu.memory_space<vmem>>, vector<4x256xf32>,
    %c1_58 = arith.constant 1 : index
    %c0_59 = arith.constant 0 : index
    %c2_60 = arith.constant 2 : index
    %51 = vector.load %arg5[%c1_58, %c0_59, %c2_60] : memref<2x4x384xf32, #tpu.memory_space<vmem>>, vector<1x4x256xf32>
    %52 = vector.shape_cast %51 : vector<1x4x256xf32> to vector<4x256xf32>
    %c8_61 = arith.constant 8 : index
    %c256_62 = arith.constant 256 : index
    %53 = vector.load %arg6[%c8_61, %c256_62] : memref<36x512xf32, #tpu.memory_space<vmem>>, vector<4x256xf32>
    tpu.vector_store %arg6[%c8_61, %c256_62], %52 {strides = array<i32>} : memref<36x512xf32, #tpu.memory_space<vmem>>, vector<4x256xf32>,
    %c1_63 = arith.constant 1 : index
    %c0_64 = arith.constant 0 : index
    %c16_65 = arith.constant 16 : index
    %54 = vector.load %arg5[%c1_63, %c0_64, %c16_65] : memref<2x4x384xf32, #tpu.memory_space<vmem>>, vector<1x4x256xf32>
    %55 = vector.shape_cast %54 : vector<1x4x256xf32> to vector<4x256xf32>
    %c12_66 = arith.constant 12 : index
    %c256_67 = arith.constant 256 : index
    %56 = vector.load %arg6[%c12_66, %c256_67] : memref<36x512xf32, #tpu.memory_space<vmem>>, vector<4x256xf32>
    tpu.vector_store %arg6[%c12_66, %c256_67], %55 {strides = array<i32>} : memref<36x512xf32, #tpu.memory_space<vmem>>, vector<4x256xf32>,
    %c1_68 = arith.constant 1 : index
    %c0_69 = arith.constant 0 : index
    %c17_70 = arith.constant 17 : index
    %57 = vector.load %arg5[%c1_68, %c0_69, %c17_70] : memref<2x4x384xf32, #tpu.memory_space<vmem>>, vector<1x4x256xf32>
    %58 = vector.shape_cast %57 : vector<1x4x256xf32> to vector<4x256xf32>
    %c16_71 = arith.constant 16 : index
    %c256_72 = arith.constant 256 : index
    %59 = vector.load %arg6[%c16_71, %c256_72] : memref<36x512xf32, #tpu.memory_space<vmem>>, vector<4x256xf32>
    tpu.vector_store %arg6[%c16_71, %c256_72], %58 {strides = array<i32>} : memref<36x512xf32, #tpu.memory_space<vmem>>, vector<4x256xf32>,
    %c1_73 = arith.constant 1 : index
    %c0_74 = arith.constant 0 : index
    %c18_75 = arith.constant 18 : index
    %60 = vector.load %arg5[%c1_73, %c0_74, %c18_75] : memref<2x4x384xf32, #tpu.memory_space<vmem>>, vector<1x4x256xf32>
    %61 = vector.shape_cast %60 : vector<1x4x256xf32> to vector<4x256xf32>
    %c20_76 = arith.constant 20 : index
    %c256_77 = arith.constant 256 : index
    %62 = vector.load %arg6[%c20_76, %c256_77] : memref<36x512xf32, #tpu.memory_space<vmem>>, vector<4x256xf32>
    tpu.vector_store %arg6[%c20_76, %c256_77], %61 {strides = array<i32>} : memref<36x512xf32, #tpu.memory_space<vmem>>, vector<4x256xf32>,
    %c1_78 = arith.constant 1 : index
    %c0_79 = arith.constant 0 : index
    %c32_80 = arith.constant 32 : index
    %63 = vector.load %arg5[%c1_78, %c0_79, %c32_80] : memref<2x4x384xf32, #tpu.memory_space<vmem>>, vector<1x4x256xf32>
    %64 = vector.shape_cast %63 : vector<1x4x256xf32> to vector<4x256xf32>
    %c24_81 = arith.constant 24 : index
    %c256_82 = arith.constant 256 : index
    %65 = vector.load %arg6[%c24_81, %c256_82] : memref<36x512xf32, #tpu.memory_space<vmem>>, vector<4x256xf32>
    tpu.vector_store %arg6[%c24_81, %c256_82], %64 {strides = array<i32>} : memref<36x512xf32, #tpu.memory_space<vmem>>, vector<4x256xf32>,
    %c1_83 = arith.constant 1 : index
    %c0_84 = arith.constant 0 : index
    %c33_85 = arith.constant 33 : index
    %66 = vector.load %arg5[%c1_83, %c0_84, %c33_85] : memref<2x4x384xf32, #tpu.memory_space<vmem>>, vector<1x4x256xf32>
    %67 = vector.shape_cast %66 : vector<1x4x256xf32> to vector<4x256xf32>
    %c28_86 = arith.constant 28 : index
    %c256_87 = arith.constant 256 : index
    %68 = vector.load %arg6[%c28_86, %c256_87] : memref<36x512xf32, #tpu.memory_space<vmem>>, vector<4x256xf32>
    tpu.vector_store %arg6[%c28_86, %c256_87], %67 {strides = array<i32>} : memref<36x512xf32, #tpu.memory_space<vmem>>, vector<4x256xf32>,
    %c1_88 = arith.constant 1 : index
    %c0_89 = arith.constant 0 : index
    %c34_90 = arith.constant 34 : index
    %69 = vector.load %arg5[%c1_88, %c0_89, %c34_90] : memref<2x4x384xf32, #tpu.memory_space<vmem>>, vector<1x4x256xf32>
    %70 = vector.shape_cast %69 : vector<1x4x256xf32> to vector<4x256xf32>
    %c32_91 = arith.constant 32 : index
    %c256_92 = arith.constant 256 : index
    %71 = vector.load %arg6[%c32_91, %c256_92] : memref<36x512xf32, #tpu.memory_space<vmem>>, vector<4x256xf32>
    tpu.vector_store %arg6[%c32_91, %c256_92], %70 {strides = array<i32>} : memref<36x512xf32, #tpu.memory_space<vmem>>, vector<4x256xf32>,
    %c0_93 = arith.constant 0 : index
    %c0_94 = arith.constant 0 : index
    %72 = vector.load %arg2[%c0_93, %c0_94] : memref<8x36xf32, #tpu.memory_space<vmem>>, vector<8x36xf32>
    %c0_95 = arith.constant 0 : index
    %c0_96 = arith.constant 0 : index
    %73 = vector.load %arg6[%c0_95, %c0_96] : memref<36x512xf32, #tpu.memory_space<vmem>>, vector<36x512xf32>
    %cst_97 = arith.constant dense<0.000000e+00> : vector<8x512xf32>
    %74 = tpu.matmul %72, %73, %cst_97 {dimension_numbers = #tpu.dot_dimension_numbers<[1], [0], [0], [1], [0, 0, 1, 1], [], []>} : vector<8x36xf32>, vector<36x512xf32>, vector<8x512xf32> -> vector<8x512xf32>
    %c0_98 = arith.constant 0 : index
    %c0_99 = arith.constant 0 : index
    %75 = vector.load %arg3[%c0_98, %c0_99] : memref<8x1xf32, #tpu.memory_space<vmem>>, vector<8x1xf32>
    %76 = vector.extract_strided_slice %74 {offsets = [0, 0], sizes = [8, 256], strides = [1, 1]} : vector<8x512xf32> to vector<8x256xf32>
    %77 = vector.broadcast %75 : vector<8x1xf32> to vector<8x256xf32>
    %78 = arith.addf %76, %77 : vector<8x256xf32>
    %c0_100 = arith.constant 0 : index
    %c0_101 = arith.constant 0 : index
    %c0_102 = arith.constant 0 : index
    %79 = vector.load %arg4[%c0_100, %c0_101, %c0_102] : memref<2x8x256xf32, #tpu.memory_space<vmem>>, vector<1x8x256xf32>
    %80 = vector.shape_cast %79 : vector<1x8x256xf32> to vector<8x256xf32>
    %81 = vector.shape_cast %78 : vector<8x256xf32> to vector<1x8x256xf32>
    tpu.vector_store %arg4[%c0_100, %c0_101, %c0_102], %81 {strides = array<i32>} : memref<2x8x256xf32, #tpu.memory_space<vmem>>, vector<1x8x256xf32>,
    %82 = vector.extract_strided_slice %74 {offsets = [0, 256], sizes = [8, 256], strides = [1, 1]} : vector<8x512xf32> to vector<8x256xf32>
    %83 = vector.broadcast %75 : vector<8x1xf32> to vector<8x256xf32>
    %84 = arith.addf %82, %83 : vector<8x256xf32>
    %c1_103 = arith.constant 1 : index
    %c0_104 = arith.constant 0 : index
    %c0_105 = arith.constant 0 : index
    %85 = vector.load %arg4[%c1_103, %c0_104, %c0_105] : memref<2x8x256xf32, #tpu.memory_space<vmem>>, vector<1x8x256xf32>
    %86 = vector.shape_cast %85 : vector<1x8x256xf32> to vector<8x256xf32>
    %87 = vector.shape_cast %84 : vector<8x256xf32> to vector<1x8x256xf32>
    tpu.vector_store %arg4[%c1_103, %c0_104, %c0_105], %87 {strides = array<i32>} : memref<2x8x256xf32, #tpu.memory_space<vmem>>, vector<1x8x256xf32>,
    return
  }
  func.func @transform_0(%arg0: i32) -> (i32, i32, i32) {
    %c0_i32 = arith.constant 0 : i32
    %c0_i32_0 = arith.constant 0 : i32
    %c0_i32_1 = arith.constant 0 : i32
    return %arg0, %c0_i32, %c0_i32_0 : i32, i32, i32
  }
  func.func @transform_1(%arg0: i32) -> (i32, i32) {
    %c0_i32 = arith.constant 0 : i32
    %c0_i32_0 = arith.constant 0 : i32
    %c0_i32_1 = arith.constant 0 : i32
    return %c0_i32, %c0_i32_0 : i32, i32
  }
  func.func @transform_2(%arg0: i32) -> (i32, i32) {
    %c0_i32 = arith.constant 0 : i32
    %c0_i32_0 = arith.constant 0 : i32
    %c0_i32_1 = arith.constant 0 : i32
    return %c0_i32, %c0_i32_0 : i32, i32
  }
  func.func @transform_3(%arg0: i32) -> (i32, i32, i32) {
    %c0_i32 = arith.constant 0 : i32
    %c0_i32_0 = arith.constant 0 : i32
    %c0_i32_1 = arith.constant 0 : i32
    return %arg0, %c0_i32, %c0_i32_0 : i32, i32, i32
  }
}

</mosaic_0001>

<bundles_post_ra>
// kernel: fft_conv2d_forward.1
= control target key start
LH: loop header
LB: loop body
LE: loop exit
PB: predicated region body
PF: predicated region fallthrough
CT: control target
= control target key end

     0   :  { %v589_v1 = vmov 0.0   ;;  %s590_s16 = smov 127   ;;  %s592_s17 = smov 126   ;;  %v598_v27 = vmov 0   ;;  %vm40_vm0 = vcmask 1039360   ;;  %vm77_vm1 = vcmask 916480   ;;  %s730_s0 = inlined_call_operand.vmem [shape: f32[2,4,256], index: 0, kind: input, shape index: {}]   ;;  %s731_s2 = inlined_call_operand.vmem [shape: f32[8,1], index: 2, kind: input, shape index: {}]   ;;  %s732_s1 = inlined_call_operand.vmem [shape: f32[8,36], index: 1, kind: input, shape index: {}]   ;;  %s733_s3 = inlined_call_operand.vmem [shape: f32[2,8,256], index: 3, kind: output, shape index: {}]  }
   0x1   :  { %v622_v0 = vld [vmem:[%s730_s0] sm:$0xff]  ;;  %16 = vst [vmem:[#allocation2 + $0x8] sm:$0xf] %v589_v1  ;;  %21 = vst [vmem:[#allocation2 + $0x14] sm:$0xf] %v589_v1  ;;  %v627_v2 = vld [vmem:[%s730_s0 + $0x8] sm:$0xff]  ;;  %424 = vmatprep.mubr.f32.mxu0 %v589_v1  ;;  %495 = vmatprep.mubr.f32.mxu1 %v589_v1 }
   0x2   :  { %36 = vrot.lane.b32.xlu0 %v622_v0, %s590_s16  ;;  %v633_v3 = vcombine.high %v622_v0, %v622_v0  ;;  %v637_v4 = vcombine.high %v627_v2, %v627_v2  ;;  %26 = vst [vmem:[#allocation3] sm:$0xf] %v622_v0  ;;  %180 = vst [vmem:[#allocation3 + $0x10] sm:$0xf] %v627_v2  ;;  %s591_s0 = smov 112   ;;  %v32_v12 = vcombine.low %v622_v0, %v622_v0  ;;  %s593_s18 = smov 111  }
   0x3   :  { %v186_v13 = vcombine.low %v627_v2, %v627_v2  ;;  %s594_s19 = smov 110   ;;  %s595_s20 = smov 96   ;;  %576 = vset.pattern.permute.xlu0 %v598_v27  ;;  %v502_v28 = vld [vmem:[%s731_s2] sm:$0xff]  ;;  %vm58_vm2 = vcmask 1031168   ;;  %vm95_vm3 = vcmask 908288   ;;  %vm114_vm4 = vcmask 900096  }
   0x4   :  { %27 = vst [vmem:[#allocation3 + $0x8] sm:$0xf] %v633_v3  ;;  %181 = vst [vmem:[#allocation3 + $0x18] sm:$0xf] %v637_v4  ;;  %s596_s21 = smov 95   ;;  %s597_s22 = smov 94  }
   0x5   :  { %vm132_vm5 = vcmask 785408   ;;  %vm151_vm6 = vcmask 777216   ;;  %vm169_vm7 = vcmask 769024   ;;  %vm347_vm8 = vcmask 1043456  }
   0x6   :  { %73 = vrot.lane.b32.xlu0 %v622_v0, %s591_s0  ;;  %vm343_vm9 = vcmask 293888  }
   0x8   :  { %v48_v5 = vld [vmem:[#allocation2 + $0x8] sm:$0xf]  ;;  %v201_v6 = vld [vmem:[#allocation2 + $0x14] sm:$0xf] }
   0x9   :  { %v556_v7 = vpack.i.bf16 %v201_v6, %v48_v5  ;;  %v579_v8 = vld [vmem:[#allocation2 + $0x8] ss:$0 sps:$4 sm:$0xff]   ;;  %v580_v10 = vld [vmem:[#allocation2 + $0x14] ss:$0 sps:$4 sm:$0xff]  }
   0xa   :  { %v578_v9 = vld [vmem:[#allocation2 + $0x8] ss:$0 sps:$4 sm:$0xff]   ;;  %38 = vrot.lane.b32.xlu0 %v579_v8, %s590_s16  ;;  %v584_v11 = vld [vmem:[#allocation2 + $0x14] ss:$0 sps:$4 sm:$0xff]  }
   0xb   :  { %557 = vrot.lane.b32.xlu1 %v556_v7, %s592_s17  ;;  %v85_v14 = vld [vmem:[#allocation2 + $0x8] sm:$0xf]  ;;  %v236_v15 = vld [vmem:[#allocation2 + $0x14] sm:$0xf] }
   0xc   :  { %v561_v16 = vpack.i.bf16 %v236_v15, %v85_v14  ;;  %v585_v17 = vld [vmem:[#allocation2 + $0x8] ss:$0 sps:$4 sm:$0xff]   ;;  %v271_v19 = vld [vmem:[#allocation2 + $0x14] sm:$0xf] }
   0xd   :  { %v122_v18 = vld [vmem:[#allocation2 + $0x8] sm:$0xf]  ;;  %v587_v22 = vld [vmem:[#allocation2 + $0x14] ss:$0 sps:$4 sm:$0xff]  }
   0xe   :  { %190 = vrot.lane.b32.xlu0 %v627_v2, %s590_s16  ;;  %v566_v20 = vpack.i.bf16 %v271_v19, %v122_v18  ;;  %v586_v21 = vld [vmem:[#allocation2 + $0x8] ss:$0 sps:$4 sm:$0xff]   ;;  %v588_v23 = vld [vmem:[#allocation2 + $0x14] ss:$0 sps:$4 sm:$0xff]  }
   0xf   :  { %75 = vrot.lane.b32.xlu1 %v578_v9, %s591_s0  ;;  %v159_v24 = vld [vmem:[#allocation2 + $0x8] sm:$0xf]  ;;  %v306_v25 = vld [vmem:[#allocation2 + $0x14] sm:$0xf] }
  0x10   :  { %v571_v26 = vpack.i.bf16 %v306_v25, %v159_v24 }
  0x12   :  { %207 = vrot.lane.b32.xlu0 %v637_v4, %s592_s17 }
  0x13   :  { %192 = vrot.lane.b32.xlu1 %v580_v10, %s590_s16 }
  0x16   :  { %227 = vrot.lane.b32.xlu0 %v584_v11, %s591_s0 }
  0x17   :  { %54 = vrot.lane.b32.xlu1 %v633_v3, %s592_s17 }
  0x1a   :  { %52 = vrot.lane.b32.xlu0 %v622_v0, %s592_s17 }
  0x1b   :  { %225 = vrot.lane.b32.xlu1 %v627_v2, %s591_s0 }
  0x1e   :  { %188 = vrot.lane.b32.xlu0 %v186_v13, %s590_s16 }
  0x1f   :  { %34 = vrot.lane.b32.xlu1 %v32_v12, %s590_s16 }
  0x22   :  { %223 = vrot.lane.b32.xlu0 %v186_v13, %s591_s0 }
  0x23   :  { %71 = vrot.lane.b32.xlu1 %v32_v12, %s591_s0 }
  0x26   :  { %562 = vrot.lane.b32.xlu0 %v561_v16, %s593_s18 }
  0x27   :  { %205 = vrot.lane.b32.xlu1 %v627_v2, %s592_s17 }
  0x2a   :  { %112 = vrot.lane.b32.xlu0 %v585_v17, %s594_s19 }
  0x2b   :  { %91 = vrot.lane.b32.xlu1 %v633_v3, %s593_s18 }
  0x2e   :  { %567 = vrot.lane.b32.xlu0 %v566_v20, %s595_s20 }
  0x2f   :  { %110 = vrot.lane.b32.xlu1 %v622_v0, %s594_s19 }
  0x32   :  { %149 = vrot.lane.b32.xlu0 %v586_v21, %s596_s21 }
  0x33   :  { %128 = vrot.lane.b32.xlu1 %v633_v3, %s595_s20 }
  0x36   :  { %260 = vrot.lane.b32.xlu0 %v627_v2, %s594_s19 }
  0x37   :  { %147 = vrot.lane.b32.xlu1 %v622_v0, %s596_s21 }
  0x3a   :  { %277 = vrot.lane.b32.xlu0 %v637_v4, %s595_s20 }
  0x3b   :  { %242 = vrot.lane.b32.xlu1 %v637_v4, %s593_s18 }
  0x3e   :  { %297 = vrot.lane.b32.xlu0 %v588_v23, %s596_s21 }
  0x3f   :  { %262 = vrot.lane.b32.xlu1 %v587_v22, %s594_s19 }
  0x42   :  { %108 = vrot.lane.b32.xlu0 %v32_v12, %s594_s19 }
  0x43   :  { %295 = vrot.lane.b32.xlu1 %v627_v2, %s596_s21 }
  0x46   :  { %145 = vrot.lane.b32.xlu0 %v32_v12, %s596_s21 }
  0x47   :  { %89 = vrot.lane.b32.xlu1 %v622_v0, %s593_s18 }
  0x4a   :  { %258 = vrot.lane.b32.xlu0 %v186_v13, %s594_s19 }
  0x4b   :  { %126 = vrot.lane.b32.xlu1 %v622_v0, %s595_s20 }
  0x4e   :  { %293 = vrot.lane.b32.xlu0 %v186_v13, %s596_s21 }
  0x4f   :  { %240 = vrot.lane.b32.xlu1 %v627_v2, %s593_s18 }
  0x52   :  { %572 = vrot.lane.b32.xlu0 %v571_v26, %s597_s22 }
  0x53   :  { %275 = vrot.lane.b32.xlu1 %v627_v2, %s595_s20 }
  0x56   :  { %163 = vrot.lane.b32.xlu0 %v622_v0, %s597_s22 }
  0x57   :  { %165 = vrot.lane.b32.xlu1 %v633_v3, %s597_s22 }
  0x5a   :  { %505 = vperm.xlu0 %576, %v502_v28  }
  0x5b   :  { %312 = vrot.lane.b32.xlu1 %v637_v4, %s597_s22 }
  0x5f   :  { %310 = vrot.lane.b32.xlu1 %v627_v2, %s597_s22 }
  0x74   :  { %v37_v29 = vpop.permute.xlu0 %36 }
  0x78   :  { %v74_v30 = vpop.permute.xlu0 %73 }
  0x7c   :  { %v39_v32 = vpop.permute.xlu0 %38 }
  0x7d   :  { %v558_v31 = vpop.permute.xlu1 %557  ;;  %v42_v33 = vsel %vm40_vm0, %v37_v29, %v39_v32 }
  0x7e   :  { %46 = vst [vmem:[#allocation3 + $0x8] sm:$0xf0] %v42_v33  ;;  %v560_v37 = vunpack.i.h.bf16 %v558_v31  ;;  %v559_v42 = vunpack.i.l.bf16 %v558_v31 }
  0x80   :  { %v191_v35 = vpop.permute.xlu0 %190 }
  0x81   :  { %v76_v34 = vpop.permute.xlu1 %75 }
  0x82   :  { %v79_v36 = vsel %vm77_vm1, %v74_v30, %v76_v34 }
  0x83   :  { %83 = vst [vmem:[#allocation3 + $0x28] sm:$0xf0] %v79_v36 }
  0x84   :  { %v208_v39 = vpop.permute.xlu0 %207 }
  0x85   :  { %v193_v38 = vpop.permute.xlu1 %192  ;;  %v212_v41 = vsel %vm58_vm2, %v208_v39, %v560_v37  ;;  %v324_v53 = vld [vmem:[#allocation3 + $0x8] sm:$0xff] }
  0x86   :  { %v195_v40 = vsel %vm40_vm0, %v191_v35, %v193_v38  ;;  %216 = vst [vmem:[#allocation3 + $0x38] sm:$0xf] %v212_v41 }
  0x87   :  { %199 = vst [vmem:[#allocation3 + $0x18] sm:$0xf0] %v195_v40 }
  0x88   :  { %v228_v44 = vpop.permute.xlu0 %227 }
  0x89   :  { %v55_v43 = vpop.permute.xlu1 %54 }
  0x8a   :  { %v60_v45 = vsel %vm58_vm2, %v55_v43, %v559_v42 }
  0x8b   :  { %64 = vst [vmem:[#allocation3 + $0x28] sm:$0xf] %v60_v45 }
  0x8c   :  { %v53_v47 = vpop.permute.xlu0 %52 }
  0x8d   :  { %v226_v46 = vpop.permute.xlu1 %225  ;;  %v59_v49 = vsel %vm58_vm2, %v53_v47, %v55_v43 }
  0x8e   :  { %v230_v48 = vsel %vm77_vm1, %v226_v46, %v228_v44  ;;  %63 = vst [vmem:[#allocation3 + $0x20] sm:$0xf] %v59_v49  ;;  %v326_v60 = vld [vmem:[#allocation3 + $0x18] sm:$0xff] }
  0x8f   :  { %234 = vst [vmem:[#allocation3 + $0x38] sm:$0xf0] %v230_v48 }
  0x90   :  { %v189_v51 = vpop.permute.xlu0 %188 }
  0x91   :  { %v35_v50 = vpop.permute.xlu1 %34  ;;  %v194_v55 = vsel %vm40_vm0, %v189_v51, %v191_v35 }
  0x92   :  { %v41_v52 = vsel %vm40_vm0, %v35_v50, %v37_v29  ;;  %v328_v54 = vld [vmem:[#allocation3 + $0x28] sm:$0xff]  ;;  %198 = vst [vmem:[#allocation3 + $0x10] sm:$0xf0] %v194_v55 }
  0x93   :  { %45 = vst [vmem:[#allocation3] sm:$0xf0] %v41_v52  ;;  %v530_v56 = vpack.c.bf16 %v328_v54, %v324_v53 }
  0x94   :  { %v224_v58 = vpop.permute.xlu0 %223 }
  0x95   :  { %v72_v57 = vpop.permute.xlu1 %71  ;;  %531 = vmatprep.subr.bf16.mxu0 %v530_v56  ;;  %v229_v62 = vsel %vm77_vm1, %v224_v58, %v226_v46 }
  0x96   :  { %v78_v59 = vsel %vm77_vm1, %v72_v57, %v74_v30  ;;  %v330_v61 = vld [vmem:[#allocation3 + $0x38] sm:$0xff]  ;;  %233 = vst [vmem:[#allocation3 + $0x30] sm:$0xf0] %v229_v62 }
  0x97   :  { %82 = vst [vmem:[#allocation3 + $0x20] sm:$0xf0] %v78_v59  ;;  %v538_v63 = vpack.c.bf16 %v330_v61, %v326_v60 }
  0x98   :  { %v563_v1 = vpop.permute.xlu0 %562 }
  0x99   :  { %v206_v0 = vpop.permute.xlu1 %205  ;;  %539 = vmatprep.subr.bf16.mxu1 %v538_v63  ;;  %v564_v3 = vunpack.i.l.bf16 %v563_v1  ;;  %v325_v14 = vld [vmem:[#allocation3 + $0x10] sm:$0xff]  ;;  %v565_v24 = vunpack.i.h.bf16 %v563_v1 }
  0x9a   :  { %v211_v2 = vsel %vm58_vm2, %v206_v0, %v208_v39  ;;  %v323_v6 = vld [vmem:[#allocation3] sm:$0xff] }
  0x9b   :  { %215 = vst [vmem:[#allocation3 + $0x30] sm:$0xf] %v211_v2 }
  0x9c   :  { %v113_v5 = vpop.permute.xlu0 %112 }
  0x9d   :  { %v92_v4 = vpop.permute.xlu1 %91 }
  0x9e   :  { %v327_v7 = vld [vmem:[#allocation3 + $0x20] sm:$0xff]  ;;  %v97_v8 = vsel %vm95_vm3, %v92_v4, %v564_v3 }
  0x9f   :  { %v532_v9 = vpack.c.bf16 %v327_v7, %v323_v6  ;;  %101 = vst [vmem:[#allocation3 + $0x48] sm:$0xf] %v97_v8 }
  0xa0   :  { %v568_v11 = vpop.permute.xlu0 %567 }
  0xa1   :  { %v111_v10 = vpop.permute.xlu1 %110  ;;  %533 = vmatpush1.bf16.msra.mxu0 %v532_v9  ;;  %v569_v13 = vunpack.i.l.bf16 %v568_v11  ;;  %v570_v22 = vunpack.i.h.bf16 %v568_v11  ;;  %v322_v11 = vld [vmem:[%s732_s1] sm:$0xff] }
  0xa2   :  { %v116_v12 = vsel %vm114_vm4, %v111_v10, %v113_v5  ;;  %v329_v15 = vld [vmem:[#allocation3 + $0x30] sm:$0xff] }
  0xa3   :  { %120 = vst [vmem:[#allocation3 + $0x48] sm:$0xf0] %v116_v12  ;;  %v540_v16 = vpack.c.bf16 %v329_v15, %v325_v14 }
  0xa4   :  { %v150_v18 = vpop.permute.xlu0 %149 }
  0xa5   :  { %v129_v17 = vpop.permute.xlu1 %128  ;;  %541 = vmatpush1.bf16.msra.mxu1 %v540_v16 }
  0xa6   :  { %v134_v19 = vsel %vm132_vm5, %v129_v17, %v569_v13 }
  0xa7   :  { %138 = vst [vmem:[#allocation3 + $0x68] sm:$0xf] %v134_v19 }
  0xa8   :  { %v261_v21 = vpop.permute.xlu0 %260 }
  0xa9   :  { %v148_v20 = vpop.permute.xlu1 %147 }
  0xaa   :  { %v153_v23 = vsel %vm151_vm6, %v148_v20, %v150_v18  ;;  %v332_v32 = vld [vmem:[#allocation3 + $0x48] sm:$0xff] }
  0xab   :  { %157 = vst [vmem:[#allocation3 + $0x68] sm:$0xf0] %v153_v23 }
  0xac   :  { %v278_v26 = vpop.permute.xlu0 %277 }
  0xad   :  { %v243_v25 = vpop.permute.xlu1 %242  ;;  %v282_v28 = vsel %vm132_vm5, %v278_v26, %v570_v22 }
  0xae   :  { %v247_v27 = vsel %vm95_vm3, %v243_v25, %v565_v24  ;;  %286 = vst [vmem:[#allocation3 + $0x78] sm:$0xf] %v282_v28 }
  0xaf   :  { %251 = vst [vmem:[#allocation3 + $0x58] sm:$0xf] %v247_v27 }
  0xb0   :  { %v298_v30 = vpop.permute.xlu0 %297 }
  0xb1   :  { %v263_v29 = vpop.permute.xlu1 %262 }
  0xb2   :  { %v265_v31 = vsel %vm114_vm4, %v261_v21, %v263_v29  ;;  %v336_v33 = vld [vmem:[#allocation3 + $0x68] sm:$0xff] }
  0xb3   :  { %269 = vst [vmem:[#allocation3 + $0x58] sm:$0xf0] %v265_v31  ;;  %v534_v34 = vpack.c.bf16 %v336_v33, %v332_v32 }
  0xb4   :  { %v109_v36 = vpop.permute.xlu0 %108 }
  0xb5   :  { %v296_v35 = vpop.permute.xlu1 %295  ;;  %535 = vmatprep.subr.bf16.mxu0 %v534_v34  ;;  %v115_v38 = vsel %vm114_vm4, %v109_v36, %v111_v10 }
  0xb6   :  { %v300_v37 = vsel %vm151_vm6, %v296_v35, %v298_v30  ;;  %119 = vst [vmem:[#allocation3 + $0x40] sm:$0xf0] %v115_v38 }
  0xb7   :  { %304 = vst [vmem:[#allocation3 + $0x78] sm:$0xf0] %v300_v37 }
  0xb8   :  { %v146_v40 = vpop.permute.xlu0 %145 }
  0xb9   :  { %v90_v39 = vpop.permute.xlu1 %89  ;;  %v152_v42 = vsel %vm151_vm6, %v146_v40, %v148_v20 }
  0xba   :  { %v96_v41 = vsel %vm95_vm3, %v90_v39, %v92_v4  ;;  %156 = vst [vmem:[#allocation3 + $0x60] sm:$0xf0] %v152_v42  ;;  %v334_v47 = vld [vmem:[#allocation3 + $0x58] sm:$0xff] }
  0xbb   :  { %100 = vst [vmem:[#allocation3 + $0x40] sm:$0xf] %v96_v41 }
  0xbc   :  { %v259_v44 = vpop.permute.xlu0 %258 }
  0xbd   :  { %v127_v43 = vpop.permute.xlu1 %126  ;;  %v264_v46 = vsel %vm114_vm4, %v259_v44, %v261_v21 }
  0xbe   :  { %v133_v45 = vsel %vm132_vm5, %v127_v43, %v129_v17  ;;  %v338_v48 = vld [vmem:[#allocation3 + $0x78] sm:$0xff]  ;;  %268 = vst [vmem:[#allocation3 + $0x50] sm:$0xf0] %v264_v46 }
  0xbf   :  { %137 = vst [vmem:[#allocation3 + $0x60] sm:$0xf] %v133_v45  ;;  %v542_v49 = vpack.c.bf16 %v338_v48, %v334_v47 }
  0xc0   :  { %v294_v51 = vpop.permute.xlu0 %293 }
  0xc1   :  { %v241_v50 = vpop.permute.xlu1 %240  ;;  %543 = vmatprep.subr.bf16.mxu1 %v542_v49  ;;  %v299_v53 = vsel %vm151_vm6, %v294_v51, %v296_v35 }
  0xc2   :  { %v246_v52 = vsel %vm95_vm3, %v241_v50, %v243_v25  ;;  %303 = vst [vmem:[#allocation3 + $0x70] sm:$0xf0] %v299_v53  ;;  %v331_v58 = vld [vmem:[#allocation3 + $0x40] sm:$0xff] }
  0xc3   :  { %250 = vst [vmem:[#allocation3 + $0x50] sm:$0xf] %v246_v52 }
  0xc4   :  { %v573_v55 = vpop.permute.xlu0 %572 }
  0xc5   :  { %v276_v54 = vpop.permute.xlu1 %275  ;;  %v574_v57 = vunpack.i.l.bf16 %v573_v55  ;;  %v575_v63 = vunpack.i.h.bf16 %v573_v55 }
  0xc6   :  { %v281_v56 = vsel %vm132_vm5, %v276_v54, %v278_v26  ;;  %v335_v59 = vld [vmem:[#allocation3 + $0x60] sm:$0xff] }
  0xc7   :  { %285 = vst [vmem:[#allocation3 + $0x70] sm:$0xf] %v281_v56  ;;  %v536_v60 = vpack.c.bf16 %v335_v59, %v331_v58 }
  0xc8   :  { %v164_v62 = vpop.permute.xlu0 %163 }
  0xc9   :  { %v166_v61 = vpop.permute.xlu1 %165  ;;  %537 = vmatpush1.bf16.msra.mxu0 %v536_v60 }
  0xca   :  { %v171_v0 = vsel %vm169_vm7, %v166_v61, %v574_v57  ;;  %v170_v1 = vsel %vm169_vm7, %v164_v62, %v166_v61  ;;  %v333_v4 = vld [vmem:[#allocation3 + $0x50] sm:$0xff] }
  0xcb   :  { %175 = vst [vmem:[#allocation3 + $0x88] sm:$0xf] %v171_v0  ;;  %174 = vst [vmem:[#allocation3 + $0x80] sm:$0xf] %v170_v1 }
  0xcd   :  { %v313_v2 = vpop.permute.xlu1 %312 }
  0xce   :  { %v317_v3 = vsel %vm169_vm7, %v313_v2, %v575_v63  ;;  %v337_v5 = vld [vmem:[#allocation3 + $0x70] sm:$0xff] }
  0xcf   :  { %321 = vst [vmem:[#allocation3 + $0x98] sm:$0xf] %v317_v3  ;;  %v544_v6 = vpack.c.bf16 %v337_v5, %v333_v4 }
  0xd1   :  { %v311_v7 = vpop.permute.xlu1 %310  ;;  %545 = vmatpush1.bf16.msra.mxu1 %v544_v6 }
  0xd2   :  { %v316_v8 = vsel %vm169_vm7, %v311_v7, %v313_v2  ;;  %v340_v9 = vld [vmem:[#allocation3 + $0x88] sm:$0xf]  ;;  %v339_v10 = vld [vmem:[#allocation3 + $0x80] sm:$0xf] }
  0xd3   :  { %320 = vst [vmem:[#allocation3 + $0x90] sm:$0xf] %v316_v8  ;;  %522 = vmatprep.subr.msk.mxu0 %vm347_vm8, %v340_v9 }
  0xd4   :  { %523 = vmatpush1.msk.msra.mxu0 %vm347_vm8, %v339_v10 }
  0xd5   :  { %524 = vmatmul.mubr.msk.f32.vlgmr.msra.gmra.mrb[0].mxu0 %vm343_vm9, %v322_v11 }
  0xd6   :  { %v342_v12 = vld [vmem:[#allocation3 + $0x98] sm:$0xf] }
  0xd7   :  { %525 = vmatprep.subr.msk.mxu1 %vm347_vm8, %v342_v12 }
  0xd9   :  { %v506_v14 = vpop.permute.xlu0 %505 }
  0xda   :  { %v341_v13 = vld [vmem:[#allocation3 + $0x90] sm:$0xf] }
  0xdb   :  { %526 = vmatpush1.msk.msra.mxu1 %vm347_vm8, %v341_v13 }
  0xdc   :  { %527 = vmatmul.mubr.msk.f32.vlgmr.msra.gmra.mrb[0].mxu1 %vm343_vm9, %v322_v11 }
 0x1a8   :  { %v426_v15 = vpop.f32.mrb[0].mxu0 }
 0x1a9   :  { %v508_v16 = vadd.f32 %v506_v14, %v426_v15  ;;  %v428_v17 = vpop.f32.mrb[1].mxu0 }
 0x1aa   :  { %v509_v18 = vadd.f32 %v506_v14, %v428_v17 }
 0x1ab   :  { %510 = vst [vmem:[%s733_s3] sm:$0xff] %v508_v16 }
 0x1ac   :  { %511 = vst [vmem:[%s733_s3 + $0x8] sm:$0xff] %v509_v18 }
 0x1af   :  { %v497_v19 = vpop.f32.mrb[0].mxu1 }
 0x1b0   :  { %v512_v20 = vadd.f32 %v506_v14, %v497_v19  ;;  %v499_v21 = vpop.f32.mrb[1].mxu1 }
 0x1b1   :  { %v513_v22 = vadd.f32 %v506_v14, %v499_v21 }
 0x1b2   :  { %528 = vst [vmem:[%s733_s3 + $0x10] sm:$0xff] %v512_v20 }
 0x1b3   :  { %529 = vst [vmem:[%s733_s3 + $0x18] sm:$0xff] %v513_v22 }

</bundles_post_ra>
